<compile_context>
chip_gen: v5e
topology: v5e:2x2
jax: 0.10.0
libtpu: 0.0.40
codegen_flags: <defaults>
</compile_context>

<pallas_src>
import jax
import jax.numpy as jnp
from jax import lax
from jax.experimental import pallas as pl
from jax.experimental.pallas import tpu as pltpu


_TB_MAX = 8192     # max batch rows per grid step (DMA tile); multiple of 128
_CHUNK = 1024      # lane-slab width processed per inner step inside the kernel
_MIN_SPLIT = 2048  # batches >= this are split into >= 2 tiles (v7x: 2 TensorCores)


def _cdiv(a, b):
    return -(-a // b)


def _round_up(n, m):
    return _cdiv(n, m) * m


def _mlp_kernel(x_ref, w1_ref, b1_ref, w2_ref, b2_ref, w3_ref, b3_ref, o_ref):
    """Fused MLP forward on one batch tile.

    x_ref : (tb, in)  f32  -- native [batch, features] layout (batch on sublanes)
    w1_ref: (h1, in)  f32   b1_ref: (h1, 1)  f32
    w2_ref: (h2, h1)  f32   b2_ref: (h2, 1)  f32
    w3_ref: (out, h2) f32   b3_ref: (out, 1) f32
    o_ref : (out, tb) f32  -- batch on lanes (unmasked, lane-dense stores)

    Layer 1 uses dot_general contracting the shared feature dim, so the batch
    dim of x moves onto lanes inside the MXU result; layers 2/3, relu, the
    sigmoid and the output store are then fully lane-dense.  The tile is
    processed in _CHUNK-wide slabs so intermediates stay register sized.
    """
    w1 = w1_ref[...]
    b1 = b1_ref[...]
    w2 = w2_ref[...]
    b2 = b2_ref[...]
    w3 = w3_ref[...]
    b3 = b3_ref[...]

    tb = x_ref.shape[0]
    for lo in range(0, tb, _CHUNK):          # static (trace-time) chunk loop
        c = min(_CHUNK, tb - lo)
        xc = x_ref[pl.ds(lo, c), :]                                   # (c, in)

        # Hidden layer 1: relu(W1 . x^T + b1) -> (h1, c); batch -> lanes.
        h = lax.dot_general(w1, xc, (((1,), (1,)), ((), ())),
                            preferred_element_type=jnp.float32)
        h = jnp.maximum(h + b1, 0.0)

        # Hidden layer 2: relu(W2 . h + b2) -> (h2, c).
        h = jnp.dot(w2, h, preferred_element_type=jnp.float32)
        h = jnp.maximum(h + b2, 0.0)

        # Output layer: sigmoid(W3 . h + b3) -> (out, c).
        z = jnp.dot(w3, h, preferred_element_type=jnp.float32) + b3
        # exp and the approximate reciprocal both execute in the EUP slot.
        y = pl.reciprocal(1.0 + jnp.exp(-z), approx=True)
        o_ref[:, pl.ds(lo, c)] = y.astype(o_ref.dtype)


@jax.jit
def classifier_forward(x, params):
    """params = [(W1, b1), (W2, b2), (W3, b3)], W_i: [out, in], b_i: [out].

    x: [batch, in_features] float32.  Returns [batch, out] float32
    (inference forward: relu hidden layers, sigmoid output).
    """
    (w1, b1), (w2, b2), (w3, b3) = params
    batch, in_dim = x.shape
    h1, h2, out_dim = w1.shape[0], w2.shape[0], w3.shape[0]

    # --- batch tiling -----------------------------------------------------
    # Big tiles amortize the ~0.35 us/grid-step overhead; >= 2 tiles for
    # medium/large batches so both v7x TensorCores get work; the last tile may
    # be ragged (Pallas clamps the partial-block DMA; garbage lanes are
    # discarded by the [:, :batch] slice below).
    want_tiles = _cdiv(batch, _TB_MAX)
    if batch >= _MIN_SPLIT:
        want_tiles = max(want_tiles, 2)
    tb = min(_TB_MAX, _round_up(_cdiv(batch, want_tiles), 128))
    n_tiles = _cdiv(batch, tb)
    padded = n_tiles * tb

    xf = x.astype(jnp.float32)                 # no-op for f32 input, no relayout
    w1c = w1.astype(jnp.float32)
    w2c = w2.astype(jnp.float32)
    w3c = w3.astype(jnp.float32)
    b1c = b1.reshape(h1, 1).astype(jnp.float32)
    b2c = b2.reshape(h2, 1).astype(jnp.float32)
    b3c = b3.reshape(out_dim, 1).astype(jnp.float32)

    # Constant index_map -> weight/bias blocks stay VMEM-resident across tiles.
    def resident(a):
        return pl.BlockSpec(a.shape, lambda i: (0,) * a.ndim)

    cost = pl.CostEstimate(
        flops=2 * batch * (in_dim * h1 + h1 * h2 + h2 * out_dim),
        transcendentals=batch * out_dim,
        bytes_accessed=(batch * in_dim + batch * out_dim) * 4
        + (w1c.size + w2c.size + w3c.size + h1 + h2 + out_dim) * 4,
    )

    out = pl.pallas_call(
        _mlp_kernel,
        out_shape=jax.ShapeDtypeStruct((out_dim, padded), jnp.float32),
        grid=(n_tiles,),
        in_specs=[
            pl.BlockSpec((tb, in_dim), lambda i: (i, 0)),   # x tile marches with grid
            resident(w1c), resident(b1c),
            resident(w2c), resident(b2c),
            resident(w3c), resident(b3c),
        ],
        out_specs=pl.BlockSpec((out_dim, tb), lambda i: (0, i)),
        compiler_params=pltpu.CompilerParams(
            dimension_semantics=("parallel",),      # v7x: shard tiles over 2 TCs
            vmem_limit_bytes=32 * 1024 * 1024,      # ~10 MiB used at tb=8192
        ),
        cost_estimate=cost,
    )(xf, w1c, b1c, w2c, b2c, w3c, b3c)

    # Back to the PyTorch-facing [batch, out] layout, dropping tile padding.
    return out[:, :batch].T


def init_params(key, layout=(29, 16, 8, 1)):
    """Deterministic init matching nn.Linear shapes: W [out, in], b [out]."""
    params = []
    for fan_in, fan_out in zip(layout[:-1], layout[1:]):
        key, kw, kb = jax.random.split(key, 3)
        bound = 1.0 / jnp.sqrt(fan_in)
        w = jax.random.uniform(kw, (fan_out, fan_in), jnp.float32, -bound, bound)
        b = jax.random.uniform(kb, (fan_out,), jnp.float32, -bound, bound)
        params.append((w, b))
    return params


def reference_forward(x, params):
    """Pure-JAX f32 reference mirroring the torch ClassifierNN forward."""
    (w1, b1), (w2, b2), (w3, b3) = params
    h = jnp.maximum(x @ w1.T + b1, 0.0)
    h = jnp.maximum(h @ w2.T + b2, 0.0)
    return jax.nn.sigmoid(h @ w3.T + b3)


if __name__ == "__main__":
    key = jax.random.PRNGKey(0)
    k_x1, k_x2, k_p = jax.random.split(key, 3)

    layout = (29, 16, 8, 1)
    params = init_params(k_p, layout)

    # Small shape: a single ragged tile (batch < 128).
    x_small = jax.random.normal(k_x1, (8, layout[0]), jnp.float32)
    out_small = jax.block_until_ready(classifier_forward(x_small, params))
    ref_small = reference_forward(x_small, params)
    assert out_small.shape == (8, layout[-1])
    # Tolerance covers the approximate EUP reciprocal (~2^-12 rel) in the sigmoid.
    assert jnp.allclose(out_small, ref_small, atol=1e-3, rtol=1e-3), "small-batch mismatch"

    # Multi-tile path: 2 tiles of 1152 rows, ragged last tile, ragged last chunk.
    x_big = jax.random.normal(k_x2, (2200, layout[0]), jnp.float32)
    out_big = jax.block_until_ready(classifier_forward(x_big, params))
    ref_big = reference_forward(x_big, params)
    assert out_big.shape == (2200, layout[-1])
    assert jnp.allclose(out_big, ref_big, atol=1e-3, rtol=1e-3), "multi-tile mismatch"

    # TODO(synk): train()/eval() mode flags, BCELoss/Adam training, and
    # save_weights()/state_dict persistence are host-side concerns with no kernel equivalent.
    print("KERNEL_OK")
</pallas_src>

<mosaic_0001>
module attributes {stable_mosaic.version = 11 : i64} {
  func.func @_mlp_kernel(%arg0: i32, %arg1: memref<128x29xf32, #tpu.memory_space<vmem>>, %arg2: memref<16x29xf32, #tpu.memory_space<vmem>>, %arg3: memref<16x1xf32, #tpu.memory_space<vmem>>, %arg4: memref<8x16xf32, #tpu.memory_space<vmem>>, %arg5: memref<8x1xf32, #tpu.memory_space<vmem>>, %arg6: memref<1x8xf32, #tpu.memory_space<vmem>>, %arg7: memref<1x1xf32, #tpu.memory_space<vmem>>, %arg8: memref<1x128xf32, #tpu.memory_space<vmem>>) attributes {dimension_semantics = [#tpu.dimension_semantics<parallel>], iteration_bounds = array<i64: 1>, scalar_prefetch = 0 : i64, scratch_operands = 0 : i64, tpu.core_type = #tpu.core_type<tc>, window_params = [{transform_indices = @transform_0, window_bounds = array<i64: 128, 29>}, {pipeline_mode = #tpu.pipeline_mode<synchronous>, transform_indices = @transform_1, window_bounds = array<i64: 16, 29>}, {pipeline_mode = #tpu.pipeline_mode<synchronous>, transform_indices = @transform_2, window_bounds = array<i64: 16, 1>}, {pipeline_mode = #tpu.pipeline_mode<synchronous>, transform_indices = @transform_3, window_bounds = array<i64: 8, 16>}, {pipeline_mode = #tpu.pipeline_mode<synchronous>, transform_indices = @transform_4, window_bounds = array<i64: 8, 1>}, {pipeline_mode = #tpu.pipeline_mode<synchronous>, transform_indices = @transform_5, window_bounds = array<i64: 1, 8>}, {pipeline_mode = #tpu.pipeline_mode<synchronous>, transform_indices = @transform_6, window_bounds = array<i64: 1, 1>}, {transform_indices = @transform_7, window_bounds = array<i64: 1, 128>}]} {
    %c0 = arith.constant 0 : index
    %c0_0 = arith.constant 0 : index
    %0 = vector.load %arg2[%c0, %c0_0] : memref<16x29xf32, #tpu.memory_space<vmem>>, vector<16x29xf32>
    %c0_1 = arith.constant 0 : index
    %c0_2 = arith.constant 0 : index
    %1 = vector.load %arg3[%c0_1, %c0_2] : memref<16x1xf32, #tpu.memory_space<vmem>>, vector<16x1xf32>
    %c0_3 = arith.constant 0 : index
    %c0_4 = arith.constant 0 : index
    %2 = vector.load %arg4[%c0_3, %c0_4] : memref<8x16xf32, #tpu.memory_space<vmem>>, vector<8x16xf32>
    %c0_5 = arith.constant 0 : index
    %c0_6 = arith.constant 0 : index
    %3 = vector.load %arg5[%c0_5, %c0_6] : memref<8x1xf32, #tpu.memory_space<vmem>>, vector<8x1xf32>
    %c0_7 = arith.constant 0 : index
    %c0_8 = arith.constant 0 : index
    %4 = vector.load %arg6[%c0_7, %c0_8] : memref<1x8xf32, #tpu.memory_space<vmem>>, vector<1x8xf32>
    %c0_9 = arith.constant 0 : index
    %c0_10 = arith.constant 0 : index
    %5 = vector.load %arg7[%c0_9, %c0_10] : memref<1x1xf32, #tpu.memory_space<vmem>>, vector<1x1xf32>
    %c0_11 = arith.constant 0 : index
    %c0_12 = arith.constant 0 : index
    %6 = vector.load %arg1[%c0_11, %c0_12] : memref<128x29xf32, #tpu.memory_space<vmem>>, vector<128x29xf32>
    %cst = arith.constant dense<0.000000e+00> : vector<16x128xf32>
    %7 = tpu.matmul %0, %6, %cst {dimension_numbers = #tpu.dot_dimension_numbers<[1], [1], [0], [0], [0, 0, 1, 0], [], []>} : vector<16x29xf32>, vector<128x29xf32>, vector<16x128xf32> -> vector<16x128xf32>
    %8 = vector.broadcast %1 : vector<16x1xf32> to vector<16x128xf32>
    %9 = arith.addf %7, %8 : vector<16x128xf32>
    %cst_13 = arith.constant 0.000000e+00 : f32
    %10 = vector.broadcast %cst_13 : f32 to vector<16x128xf32>
    %11 = arith.maximumf %9, %10 : vector<16x128xf32>
    %cst_14 = arith.constant dense<0.000000e+00> : vector<8x128xf32>
    %12 = tpu.matmul %2, %11, %cst_14 {dimension_numbers = #tpu.dot_dimension_numbers<[1], [0], [0], [1], [0, 0, 1, 1], [], []>} : vector<8x16xf32>, vector<16x128xf32>, vector<8x128xf32> -> vector<8x128xf32>
    %13 = vector.broadcast %3 : vector<8x1xf32> to vector<8x128xf32>
    %14 = arith.addf %12, %13 : vector<8x128xf32>
    %cst_15 = arith.constant 0.000000e+00 : f32
    %15 = vector.broadcast %cst_15 : f32 to vector<8x128xf32>
    %16 = arith.maximumf %14, %15 : vector<8x128xf32>
    %cst_16 = arith.constant dense<0.000000e+00> : vector<1x128xf32>
    %17 = tpu.matmul %4, %16, %cst_16 {dimension_numbers = #tpu.dot_dimension_numbers<[1], [0], [0], [1], [0, 0, 1, 1], [], []>} : vector<1x8xf32>, vector<8x128xf32>, vector<1x128xf32> -> vector<1x128xf32>
    %18 = vector.broadcast %5 : vector<1x1xf32> to vector<1x128xf32>
    %19 = arith.addf %17, %18 : vector<1x128xf32>
    %cst_17 = arith.constant 0.000000e+00 : f32
    %20 = vector.broadcast %cst_17 : f32 to vector<1x128xf32>
    %21 = arith.subf %20, %19 : vector<1x128xf32>
    %22 = math.exp %21 : vector<1x128xf32>
    %cst_18 = arith.constant 1.000000e+00 : f32
    %23 = vector.broadcast %cst_18 : f32 to vector<1x128xf32>
    %24 = arith.addf %23, %22 : vector<1x128xf32>
    %25 = tpu.reciprocal %24 {approx = true} : vector<1x128xf32> -> vector<1x128xf32>
    %c0_19 = arith.constant 0 : index
    %c0_20 = arith.constant 0 : index
    %26 = vector.load %arg8[%c0_19, %c0_20] : memref<1x128xf32, #tpu.memory_space<vmem>>, vector<1x128xf32>
    tpu.vector_store %arg8[%c0_19, %c0_20], %25 {strides = array<i32>} : memref<1x128xf32, #tpu.memory_space<vmem>>, vector<1x128xf32>,
    return
  }
  func.func @transform_0(%arg0: i32) -> (i32, i32) {
    %c0_i32 = arith.constant 0 : i32
    %c0_i32_0 = arith.constant 0 : i32
    return %arg0, %c0_i32 : i32, i32
  }
  func.func @transform_1(%arg0: i32) -> (i32, i32) {
    %c0_i32 = arith.constant 0 : i32
    %c0_i32_0 = arith.constant 0 : i32
    %c0_i32_1 = arith.constant 0 : i32
    return %c0_i32, %c0_i32_0 : i32, i32
  }
  func.func @transform_2(%arg0: i32) -> (i32, i32) {
    %c0_i32 = arith.constant 0 : i32
    %c0_i32_0 = arith.constant 0 : i32
    %c0_i32_1 = arith.constant 0 : i32
    return %c0_i32, %c0_i32_0 : i32, i32
  }
  func.func @transform_3(%arg0: i32) -> (i32, i32) {
    %c0_i32 = arith.constant 0 : i32
    %c0_i32_0 = arith.constant 0 : i32
    %c0_i32_1 = arith.constant 0 : i32
    return %c0_i32, %c0_i32_0 : i32, i32
  }
  func.func @transform_4(%arg0: i32) -> (i32, i32) {
    %c0_i32 = arith.constant 0 : i32
    %c0_i32_0 = arith.constant 0 : i32
    %c0_i32_1 = arith.constant 0 : i32
    return %c0_i32, %c0_i32_0 : i32, i32
  }
  func.func @transform_5(%arg0: i32) -> (i32, i32) {
    %c0_i32 = arith.constant 0 : i32
    %c0_i32_0 = arith.constant 0 : i32
    %c0_i32_1 = arith.constant 0 : i32
    return %c0_i32, %c0_i32_0 : i32, i32
  }
  func.func @transform_6(%arg0: i32) -> (i32, i32) {
    %c0_i32 = arith.constant 0 : i32
    %c0_i32_0 = arith.constant 0 : i32
    %c0_i32_1 = arith.constant 0 : i32
    return %c0_i32, %c0_i32_0 : i32, i32
  }
  func.func @transform_7(%arg0: i32) -> (i32, i32) {
    %c0_i32 = arith.constant 0 : i32
    %c0_i32_0 = arith.constant 0 : i32
    return %c0_i32, %arg0 : i32, i32
  }
}

</mosaic_0001>

<bundles_post_ra>
// kernel: classifier_forward.1
= control target key start
LH: loop header
LB: loop body
LE: loop exit
PB: predicated region body
PF: predicated region fallthrough
CT: control target
= control target key end

     0   :  { %vm62_vm0 = vcmask 236544   ;;  %v255_v11 = vmov 0   ;;  %vm147_vm1 = vcmask 130048   ;;  %vm178_vm2 = vcmask 64512   ;;  %s405_s0 = inlined_call_operand.vmem [shape: f32[8,29], index: 0, kind: input, shape index: {}]   ;;  %s406_s2 = inlined_call_operand.vmem [shape: f32[16,1], index: 2, kind: input, shape index: {}]   ;;  %s407_s1 = inlined_call_operand.vmem [shape: f32[16,29], index: 1, kind: input, shape index: {}]   ;;  %s408_s4 = inlined_call_operand.vmem [shape: f32[8,1], index: 4, kind: input, shape index: {}]   ;;  %s409_s6 = inlined_call_operand.<no memory space> [shape: f32[1,1], index: 6, kind: input, shape index: {}]   ;;  %s410_s3 = inlined_call_operand.vmem [shape: f32[8,16], index: 3, kind: input, shape index: {}]   ;;  %s411_s5 = inlined_call_operand.vmem [shape: f32[1,8], index: 5, kind: input, shape index: {}]   ;;  %s412_s7 = inlined_call_operand.vmem [shape: f32[1,128], index: 7, kind: output, shape index: {}]  }
   0x1   :  { %v51_v0 = vld [vmem:[%s405_s0 + $0x78] sm:$0xff]  ;;  %v50_v1 = vld [vmem:[%s405_s0 + $0x70] sm:$0xff]  ;;  %v49_v2 = vld [vmem:[%s405_s0 + $0x68] sm:$0xff]  ;;  %249 = vset.pattern.permute.xlu0 %v255_v11  ;;  %250 = vset.pattern.permute.xlu1 %v255_v11  ;;  %v12_v22 = vstv %s409_s6 }
   0x2   :  { %212 = vmatpush.xpose.msk.msra.mxu0 %vm62_vm0, %v51_v0  ;;  %232 = vmatpush.xpose.msk.msra.mxu3 %vm62_vm0, %v51_v0  ;;  %v48_v3 = vld [vmem:[%s405_s0 + $0x60] sm:$0xff]  ;;  %v47_v4 = vld [vmem:[%s405_s0 + $0x58] sm:$0xff]  ;;  %v46_v5 = vld [vmem:[%s405_s0 + $0x50] sm:$0xff]  ;;  %13 = vst [vmem:[#allocation2] sm:$0x1] %v12_v22 }
   0x3   :  { %v45_v6 = vld [vmem:[%s405_s0 + $0x48] sm:$0xff]  ;;  %v44_v7 = vld [vmem:[%s405_s0 + $0x40] sm:$0xff]  ;;  %v43_v8 = vld [vmem:[%s405_s0 + $0x38] sm:$0xff] }
   0x4   :  { %v31_v9 = vld [vmem:[%s406_s2 + $0x8] sm:$0xff]  ;;  %v42_v10 = vld [vmem:[%s405_s0 + $0x30] sm:$0xff]  ;;  %v30_v13 = vld [vmem:[%s406_s2] sm:$0xff] }
   0x5   :  { %59 = vperm.xlu0 %249, %v31_v9   ;;  %v41_v12 = vld [vmem:[%s405_s0 + $0x28] sm:$0xff]  ;;  %v40_v14 = vld [vmem:[%s405_s0 + $0x20] sm:$0xff]  ;;  %v39_v15 = vld [vmem:[%s405_s0 + $0x18] sm:$0xff] }
   0x6   :  { %213 = vmatpush.xpose.msk.msra.mxu0 %vm62_vm0, %v50_v1  ;;  %233 = vmatpush.xpose.msk.msra.mxu3 %vm62_vm0, %v50_v1  ;;  %v38_v16 = vld [vmem:[%s405_s0 + $0x10] sm:$0xff]  ;;  %v37_v17 = vld [vmem:[%s405_s0 + $0x8] sm:$0xff]  ;;  %v36_v18 = vld [vmem:[%s405_s0] sm:$0xff] }
   0x7   :  { %v28_v19 = vld [vmem:[%s407_s1] sm:$0xff]  ;;  %v29_v20 = vld [vmem:[%s407_s1 + $0x8] sm:$0xff] }
   0x8   :  { %v33_v21 = vld [vmem:[%s408_s4] sm:$0xff] }
   0x9   :  { %144 = vperm.xlu1 %250, %v33_v21   ;;  %v35_v23 = vld [vmem:[#allocation2] sm:$0x1] }
   0xa   :  { %214 = vmatpush.xpose.msk.msra.mxu0 %vm62_vm0, %v49_v2  ;;  %234 = vmatpush.xpose.msk.msra.mxu3 %vm62_vm0, %v49_v2  ;;  %v32_v32 = vld [vmem:[%s410_s3] sm:$0xff] }
   0xb   :  { %v34_v37 = vld [vmem:[%s411_s5] sm:$0x1] }
   0xd   :  { %54 = vperm.xlu0 %249, %v30_v13  }
   0xe   :  { %215 = vmatpush.xpose.msk.msra.mxu0 %vm62_vm0, %v48_v3  ;;  %235 = vmatpush.xpose.msk.msra.mxu3 %vm62_vm0, %v48_v3 }
  0x11   :  { %174 = vperm.xlu1 %250, %v35_v23  }
  0x12   :  { %216 = vmatpush.xpose.msk.msra.mxu0 %vm62_vm0, %v47_v4  ;;  %236 = vmatpush.xpose.msk.msra.mxu3 %vm62_vm0, %v47_v4 }
  0x16   :  { %217 = vmatpush.xpose.msk.msra.mxu0 %vm62_vm0, %v46_v5  ;;  %237 = vmatpush.xpose.msk.msra.mxu3 %vm62_vm0, %v46_v5 }
  0x1a   :  { %218 = vmatpush.xpose.msk.msra.mxu0 %vm62_vm0, %v45_v6  ;;  %238 = vmatpush.xpose.msk.msra.mxu3 %vm62_vm0, %v45_v6 }
  0x1e   :  { %219 = vmatpush.xpose.msk.msra.mxu0 %vm62_vm0, %v44_v7  ;;  %239 = vmatpush.xpose.msk.msra.mxu3 %vm62_vm0, %v44_v7 }
  0x22   :  { %220 = vmatpush.xpose.msk.msra.mxu0 %vm62_vm0, %v43_v8  ;;  %240 = vmatpush.xpose.msk.msra.mxu3 %vm62_vm0, %v43_v8 }
  0x26   :  { %221 = vmatpush.xpose.msk.msra.mxu0 %vm62_vm0, %v42_v10  ;;  %241 = vmatpush.xpose.msk.msra.mxu3 %vm62_vm0, %v42_v10 }
  0x2a   :  { %222 = vmatpush.xpose.msk.msra.mxu0 %vm62_vm0, %v41_v12  ;;  %242 = vmatpush.xpose.msk.msra.mxu3 %vm62_vm0, %v41_v12 }
  0x2e   :  { %223 = vmatpush.xpose.msk.msra.mxu0 %vm62_vm0, %v40_v14  ;;  %243 = vmatpush.xpose.msk.msra.mxu3 %vm62_vm0, %v40_v14 }
  0x32   :  { %224 = vmatpush.xpose.msk.msra.mxu0 %vm62_vm0, %v39_v15  ;;  %244 = vmatpush.xpose.msk.msra.mxu3 %vm62_vm0, %v39_v15 }
  0x36   :  { %225 = vmatpush.xpose.msk.msra.mxu0 %vm62_vm0, %v38_v16  ;;  %245 = vmatpush.xpose.msk.msra.mxu3 %vm62_vm0, %v38_v16 }
  0x3a   :  { %226 = vmatpush.xpose.msk.msra.mxu0 %vm62_vm0, %v37_v17  ;;  %246 = vmatpush.xpose.msk.msra.mxu3 %vm62_vm0, %v37_v17 }
  0x3e   :  { %227 = vmatpush.xpose.msk.msra.mxu0 %vm62_vm0, %v36_v18  ;;  %247 = vmatpush.xpose.msk.msra.mxu3 %vm62_vm0, %v36_v18 }
  0x41   :  { %228 = vmatmul.msk.f32.vlgmr.msra.gmra.mxu0 %vm62_vm0, %v28_v19  ;;  %229 = vmatmul.msk.f32.vlgmr.msra.gmra.mxu3 %vm62_vm0, %v29_v20 }
  0x77   :  { %v60_v24 = vpop.permute.xlu0 %59 }
  0x7b   :  { %v145_v33 = vpop.permute.xlu1 %144 }
  0x7f   :  { %v55_v25 = vpop.permute.xlu0 %54 }
  0x83   :  { %v175_v38 = vpop.permute.xlu1 %174 }
  0x84   :  { %v177_v39 = vperm.slane %v175_v38, 0 }
  0xbe   :  { %v134_v26 = vpop.f32.mrf.mxu0 }
  0xbf   :  { %v135_v28 = vadd.f32 %v134_v26, %v55_v25 }
  0xc1   :  { %v140_v31 = vmax.f32 %v135_v28, 0.0 }
  0xc4   :  { %v137_v27 = vpop.f32.mrf.mxu3 }
  0xc5   :  { %v138_v29 = vadd.f32 %v137_v27, %v60_v24 }
  0xc7   :  { %v141_v30 = vmax.f32 %v138_v29, 0.0 }
  0xc9   :  { %165 = vmatpush.msra.mxu1 %v141_v30 }
  0xcb   :  { %166 = vmatpush.msra.mxu1 %v140_v31 }
  0xcc   :  { %230 = vmatmul.msk.f32.vlgmr.msra.gmra.mxu1 %vm147_vm1, %v32_v32 }
 0x149   :  { %v168_v34 = vpop.f32.mrf.mxu1 }
 0x14a   :  { %v169_v35 = vadd.f32 %v168_v34, %v145_v33 }
 0x14c   :  { %v171_v36 = vmax.f32 %v169_v35, 0.0 }
 0x14e   :  { %197 = vmatpush.msra.mxu2 %v171_v36 }
 0x14f   :  { %231 = vmatmul.msk.f32.vlgmr.msra.gmra.mxu2 %vm178_vm2, %v34_v37 }
 0x1d2   :  { %v199_v40 = vpop.f32.mrf.mxu2 }
 0x1d3   :  { %v200_v41 = vadd.f32 %v199_v40, %v177_v39 }
 0x1d5   :  { %v202_v42 = vsub.f32 0.0, %v200_v41 }
 0x1d7   :  { %v203_v43 = vmul.f32 1.442695, %v202_v42 }
 0x1d9   :  { %251 = vpow2.f32 %v203_v43 }
 0x1df   :  { %v252_v44 = vpop.eup %251 }
 0x1e0   :  { %v205_v45 = vadd.f32 1.0, %v252_v44 }
 0x1e2   :  { %253 = vrcp.f32 %v205_v45 }
 0x1e8   :  { %v254_v46 = vpop.eup %253 }
 0x1e9   :  { %207 = vst [vmem:[%s412_s7] sm:$0x1] %v254_v46 }

</bundles_post_ra>
